<compile_context>
chip_gen: v5e
topology: v5e:2x2
jax: 0.10.0
libtpu: 0.0.40
codegen_flags: <defaults>
</compile_context>

<pallas_src>
import functools

import jax
import jax.numpy as jnp
from jax import lax
from jax.experimental import pallas as pl
from jax.experimental.pallas import tpu as pltpu

_LANE = 128
_SUBLANE = 8
_INV_SQRT2 = 0.7071067811865476


def _gelu_kernel(x_ref, o_ref):
    # Exact GELU (torch.nn.GELU default): x * 0.5 * (1 + erf(x / sqrt(2))).
    # TODO(synk): for bf16 activations on v6e/v7x a shorter minimax erf (bf16-
    # accurate) would roughly halve VALU work; kept exact f32 for torch parity.
    x = x_ref[...].astype(jnp.float32)
    y = x * 0.5 * (1.0 + lax.erf(x * _INV_SQRT2))
    o_ref[...] = y.astype(o_ref.dtype)


def _round_up(v, m):
    return ((v + m - 1) // m) * m


@functools.lru_cache(maxsize=None)
def _hw_params():
    """Generation-aware tuning: (target_block_bytes, tensorcore_count, vmem_limit)."""
    kind = ""
    try:
        kind = jax.devices()[0].device_kind.lower()
    except Exception:
        pass
    block_bytes = 2 * 1024 * 1024  # safe default: v5e-class (16 MiB scoped VMEM)
    tc_count = 1
    vmem_limit = None
    if "v7" in kind:
        # 2 TCs/chip, 64 MiB physical VMEM/TC, ~3.2 TB/s HBM: big blocks amortize
        # the ~0.35 us/step overhead; raise the scoped limit for in+out x 2 bufs.
        block_bytes = 8 * 1024 * 1024
        tc_count = 2
        vmem_limit = 48 * 1024 * 1024
    elif "v6" in kind:
        # 32 MiB default scoped VMEM: 4 MiB blocks -> 16 MiB resident, no flag.
        block_bytes = 4 * 1024 * 1024
    elif "v5p" in kind or kind.strip() == "tpu v5":
        # megacore (2 TCs visible to the grid), generous VMEM.
        block_bytes = 4 * 1024 * 1024
        tc_count = 2
    return block_bytes, tc_count, vmem_limit


def _compiler_params(vmem_limit):
    kwargs = dict(dimension_semantics=("parallel",))
    if vmem_limit is not None:
        kwargs["vmem_limit_bytes"] = vmem_limit
    return pltpu.CompilerParams(**kwargs)


def _run(x_view, block_shape, grid, n_elems, itemsize, vmem_limit):
    ndim = len(block_shape)
    index_map = lambda i: (i,) + (0,) * (ndim - 1)
    return pl.pallas_call(
        _gelu_kernel,
        out_shape=jax.ShapeDtypeStruct(x_view.shape, x_view.dtype),
        grid=grid,
        in_specs=[pl.BlockSpec(block_shape, index_map)],
        out_specs=pl.BlockSpec(block_shape, index_map),
        compiler_params=_compiler_params(vmem_limit),
        cost_estimate=pl.CostEstimate(
            flops=10 * n_elems,
            transcendentals=n_elems,
            bytes_accessed=2 * n_elems * itemsize,
        ),
    )(x_view)


def _gelu_aligned(x_flat, out_shape, dtype, block_bytes, tc_count, vmem_limit):
    """Lane-dense (rows, 128) slab path for sizes divisible by 128. 1x traffic."""
    n = x_flat.size
    itemsize = jnp.dtype(dtype).itemsize
    itemsize_eff = max(itemsize, 4)  # kernel upcasts to f32
    rows = n // _LANE
    x2d = x_flat.reshape(rows, _LANE)

    max_tile_rows = max(
        _SUBLANE, (block_bytes // (_LANE * itemsize_eff)) // _SUBLANE * _SUBLANE
    )
    if rows <= max_tile_rows and (tc_count == 1 or rows < tc_count * _SUBLANE):
        # Single block covering the whole slab (full-dim block is always legal).
        tile_rows = rows
    else:
        tile_rows = min(max_tile_rows, _round_up(pl.cdiv(rows, tc_count), _SUBLANE))
        tile_rows = max(_SUBLANE, tile_rows)
    grid = (pl.cdiv(rows, tile_rows),)  # last block may be partial (masked)

    out2d = _run(x2d, (tile_rows, _LANE), grid, n, itemsize, vmem_limit)
    return out2d.reshape(out_shape)


def _gelu_ragged_nd(x, block_bytes, tc_count, vmem_limit):
    """Ragged sizes: keep the trailing two dims whole (legal block dims), block
    over collapsed leading dims. Avoids whole-array pad/slice (1x HBM traffic)."""
    shape = x.shape
    if x.ndim >= 3:
        lead = 1
        for d in shape[:-2]:
            lead *= int(d)
        h, w = int(shape[-2]), int(shape[-1])
    elif x.ndim == 2:
        lead, h, w = 1, int(shape[0]), int(shape[1])
    else:
        lead, h, w = 1, 1, int(shape[0])

    itemsize = jnp.dtype(x.dtype).itemsize
    itemsize_eff = max(itemsize, 4)
    inner_bytes = h * w * itemsize_eff
    if inner_bytes > 12 * 1024 * 1024:
        return None  # trailing slice too large for one block; caller falls back

    x3d = x.reshape(lead, h, w)
    lead_block = max(1, min(lead, block_bytes // inner_bytes))
    if tc_count > 1 and lead >= tc_count:
        lead_block = min(lead_block, pl.cdiv(lead, tc_count))
    grid = (pl.cdiv(lead, lead_block),)

    out3d = _run(x3d, (lead_block, h, w), grid, x.size, itemsize, vmem_limit)
    return out3d.reshape(shape)


def _gelu_pad_fallback(x, block_bytes, tc_count, vmem_limit):
    """Rare path: pad to a 128 multiple, run the slab kernel, slice back."""
    n = x.size
    n_pad = _round_up(n, _LANE)
    x_flat = jnp.pad(x.reshape(-1), (0, n_pad - n))
    out = _gelu_aligned(x_flat, (n_pad,), x.dtype, block_bytes, tc_count, vmem_limit)
    return out[:n].reshape(x.shape)


def gelu(x):
    """Exact GELU (torch.nn.GELU() default) over an arbitrarily shaped tensor."""
    if x.size == 0:
        return x
    block_bytes, tc_count, vmem_limit = _hw_params()
    n = x.size
    if n % _LANE == 0:
        return _gelu_aligned(
            x.reshape(-1), x.shape, x.dtype, block_bytes, tc_count, vmem_limit
        )
    out = _gelu_ragged_nd(x, block_bytes, tc_count, vmem_limit)
    if out is not None:
        return out
    return _gelu_pad_fallback(x, block_bytes, tc_count, vmem_limit)


if __name__ == "__main__":
    key = jax.random.PRNGKey(0)
    x = jax.random.normal(key, (2, 4, 16, 16), dtype=jnp.float32)

    out = jax.block_until_ready(gelu(x))
    ref = jax.nn.gelu(x, approximate=False)
    assert out.shape == x.shape and out.dtype == x.dtype
    assert jnp.max(jnp.abs(out - ref)) < 1e-5

    # Ragged element count exercises the no-pad trailing-dims path.
    x2 = jax.random.normal(jax.random.PRNGKey(1), (3, 5, 37, 129), dtype=jnp.float32)
    out2 = jax.block_until_ready(gelu(x2))
    ref2 = jax.nn.gelu(x2, approximate=False)
    assert out2.shape == x2.shape and out2.dtype == x2.dtype
    assert jnp.max(jnp.abs(out2 - ref2)) < 1e-5

    # bf16 path (checks the f32-footprint block sizing and dtype round-trip).
    x3 = jax.random.normal(jax.random.PRNGKey(2), (4, 8, 32), dtype=jnp.bfloat16)
    out3 = jax.block_until_ready(gelu(x3))
    ref3 = jax.nn.gelu(x3.astype(jnp.float32), approximate=False).astype(jnp.bfloat16)
    assert out3.shape == x3.shape and out3.dtype == x3.dtype
    assert jnp.max(jnp.abs(out3.astype(jnp.float32) - ref3.astype(jnp.float32))) < 2e-2

    print("KERNEL_OK")
</pallas_src>

<mosaic_0001>
module attributes {stable_mosaic.version = 11 : i64} {
  func.func @_gelu_kernel(%arg0: i32, %arg1: memref<16x128xf32, #tpu.memory_space<vmem>>, %arg2: memref<16x128xf32, #tpu.memory_space<vmem>>) attributes {dimension_semantics = [#tpu.dimension_semantics<parallel>], iteration_bounds = array<i64: 1>, scalar_prefetch = 0 : i64, scratch_operands = 0 : i64, tpu.core_type = #tpu.core_type<tc>, window_params = [{transform_indices = @transform_0, window_bounds = array<i64: 16, 128>}, {transform_indices = @transform_1, window_bounds = array<i64: 16, 128>}]} {
    %c0 = arith.constant 0 : index
    %c0_0 = arith.constant 0 : index
    %0 = vector.load %arg1[%c0, %c0_0] : memref<16x128xf32, #tpu.memory_space<vmem>>, vector<16x128xf32>
    %cst = arith.constant 5.000000e-01 : f32
    %1 = vector.broadcast %cst : f32 to vector<16x128xf32>
    %2 = arith.mulf %0, %1 : vector<16x128xf32>
    %cst_1 = arith.constant 0.707106769 : f32
    %3 = vector.broadcast %cst_1 : f32 to vector<16x128xf32>
    %4 = arith.mulf %0, %3 : vector<16x128xf32>
    %5 = math.erf %4 : vector<16x128xf32>
    %cst_2 = arith.constant 1.000000e+00 : f32
    %6 = vector.broadcast %cst_2 : f32 to vector<16x128xf32>
    %7 = arith.addf %6, %5 : vector<16x128xf32>
    %8 = arith.mulf %2, %7 : vector<16x128xf32>
    %c0_3 = arith.constant 0 : index
    %c0_4 = arith.constant 0 : index
    %9 = vector.load %arg2[%c0_3, %c0_4] : memref<16x128xf32, #tpu.memory_space<vmem>>, vector<16x128xf32>
    tpu.vector_store %arg2[%c0_3, %c0_4], %8 {strides = array<i32>} : memref<16x128xf32, #tpu.memory_space<vmem>>, vector<16x128xf32>,
    return
  }
  func.func @transform_0(%arg0: i32) -> (i32, i32) {
    %c0_i32 = arith.constant 0 : i32
    %c0_i32_0 = arith.constant 0 : i32
    return %arg0, %c0_i32 : i32, i32
  }
  func.func @transform_1(%arg0: i32) -> (i32, i32) {
    %c0_i32 = arith.constant 0 : i32
    %c0_i32_0 = arith.constant 0 : i32
    return %arg0, %c0_i32 : i32, i32
  }
}

</mosaic_0001>

<bundles_post_ra>
// kernel: tpu_custom_call.1
= control target key start
LH: loop header
LB: loop body
LE: loop exit
PB: predicated region body
PF: predicated region fallthrough
CT: control target
= control target key end

     0   :  { %6 = vsyncpa [#allocation3], 0  ;;  %s242_s0 = inlined_call_operand.hbm [shape: f32[16,128], index: 0, kind: input, shape index: {}]   ;;  %s243_s1 = inlined_call_operand.hbm [shape: f32[16,128], index: 1, kind: output, shape index: {}]  }
   0x1   :  { %7 = vsyncpa [#allocation4], 0  ;;  %s12_s8 = sshll.u32 %s242_s0, 4  ;;  %s198_s9 = smov [#allocation2]   ;;  %s13_s8 = int_to_ptr.hbm [resolvable:$true] %s12_s8 }
   0x2   :  { %s14_s10 = sshll.u32 %s198_s9, 4  ;;  %s199_s11 = smov 128   ;;  %s15_s10 = int_to_ptr.vmem [resolvable:$true] %s14_s10 }
   0x3   :  { %s200_s12 = smov 8  }
   0x4   :  { %20 = dma.hbm_to_vmem [thread:$0]  %s13_s8, 256, %s15_s10, [#allocation3], %s199_s11, %s199_s11, %s200_s12  }
   0x5   :  { %194 = dma.done.wait [#allocation3], 256  }
   0x6   :  { %195 = vsyncadd [#allocation3], 4294967040  ;;  %v218_v0 = vld [vmem:[#allocation2] sm:$0xff]  ;;  %v220_v1 = vld [vmem:[#allocation2 + $0x8] sm:$0xff]  ;;  %s201_s0 = smov [#allocation5]   ;;  %s123_s16 = sshll.u32 %s243_s1, 4  ;;  %s124_s16 = int_to_ptr.hbm [resolvable:$true] %s123_s16 }
   0x7   :  { %v223_v2 = vmul.f32 0.70710677, %v218_v0  ;;  %v226_v3 = vmul.f32 0.70710677, %v220_v1  ;;  %s121_s13 = sshll.u32 %s201_s0, 4  ;;  %s122_s13 = int_to_ptr.vmem [resolvable:$true] %s121_s13 }
   0x9   :  { %v31_v4 = vmul.f32 %v223_v2, %v223_v2  ;;  %v71_v5 = vmul.f32 %v226_v3, %v226_v3 }
   0xb   :  { %v32_v6 = vmin.f32 %v31_v4, 16.0  ;;  %v72_v7 = vmin.f32 %v71_v5, 16.0 }
   0xd   :  { %v33_v8 = vmul.f32 2.1237322e-06, %v32_v6  ;;  %v44_v9 = vmul.f32 3.8918573e-05, %v32_v6  ;;  %v73_v10 = vmul.f32 2.1237322e-06, %v72_v7 }
   0xe   :  { %v84_v11 = vmul.f32 3.8918573e-05, %v72_v7 }
   0xf   :  { %v34_v12 = vadd.f32 0.00028619796, %v33_v8  ;;  %v45_v13 = vadd.f32 0.001143296, %v44_v9  ;;  %v74_v14 = vadd.f32 0.00028619796, %v73_v10 }
  0x10   :  { %v85_v15 = vadd.f32 0.001143296, %v84_v11 }
  0x11   :  { %v35_v16 = vmul.f32 %v34_v12, %v32_v6  ;;  %v46_v17 = vmul.f32 %v45_v13, %v32_v6  ;;  %v75_v18 = vmul.f32 %v74_v14, %v72_v7  ;;  %v27_v12 = vmul.f32 0.5, %v218_v0 }
  0x12   :  { %v86_v19 = vmul.f32 %v85_v15, %v72_v7  ;;  %v28_v14 = vmul.f32 0.5, %v220_v1 }
  0x13   :  { %v36_v20 = vadd.f32 0.0036580483, %v35_v16  ;;  %v47_v21 = vadd.f32 0.014752088, %v46_v17  ;;  %v76_v22 = vadd.f32 0.0036580483, %v75_v18 }
  0x14   :  { %v87_v23 = vadd.f32 0.014752088, %v86_v19 }
  0x15   :  { %v37_v24 = vmul.f32 %v36_v20, %v32_v6  ;;  %v48_v25 = vmul.f32 %v47_v21, %v32_v6  ;;  %v77_v26 = vmul.f32 %v76_v22, %v72_v7 }
  0x16   :  { %v88_v27 = vmul.f32 %v87_v23, %v72_v7 }
  0x17   :  { %v49_v28 = vadd.f32 0.112945676, %v48_v25  ;;  %v38_v29 = vadd.f32 0.05243302, %v37_v24  ;;  %v78_v32 = vadd.f32 0.05243302, %v77_v26 }
  0x18   :  { %v89_v30 = vadd.f32 0.112945676, %v88_v27 }
  0x19   :  { %v50_v31 = vmul.f32 %v49_v28, %v32_v6  ;;  %v39_v35 = vmul.f32 %v38_v29, %v32_v6  ;;  %v79_v38 = vmul.f32 %v78_v32, %v72_v7 }
  0x1a   :  { %v90_v33 = vmul.f32 %v89_v30, %v72_v7 }
  0x1b   :  { %v51_v34 = vadd.f32 0.4994258, %v50_v31  ;;  %v40_v41 = vadd.f32 0.18741608, %v39_v35  ;;  %v80_v43 = vadd.f32 0.18741608, %v79_v38 }
  0x1c   :  { %v91_v36 = vadd.f32 0.4994258, %v90_v33 }
  0x1d   :  { %v52_v37 = vmul.f32 %v51_v34, %v32_v6  ;;  %v41_v44 = vmul.f32 %v40_v41, %v32_v6  ;;  %v81_v45 = vmul.f32 %v80_v43, %v72_v7 }
  0x1e   :  { %v92_v39 = vmul.f32 %v91_v36, %v72_v7 }
  0x1f   :  { %v53_v40 = vadd.f32 1.0, %v52_v37  ;;  %v42_v48 = vadd.f32 1.1283791, %v41_v44  ;;  %v82_v51 = vadd.f32 1.1283791, %v81_v45 }
  0x20   :  { %v93_v42 = vadd.f32 1.0, %v92_v39 }
  0x21   :  { %142 = vrcp.f32 %v53_v40  ;;  %vm59_vm0 = vweird.f32 %v53_v40  ;;  %v65_v50 = vand.u32 2147483648, %v53_v40  ;;  %v63_v54 = vand.u32 2147483647, %v53_v40 }
  0x22   :  { %144 = vrcp.f32 %v93_v42  ;;  %v105_v55 = vand.u32 2147483648, %v93_v42  ;;  %vm99_vm2 = vweird.f32 %v93_v42  ;;  %v103_v57 = vand.u32 2147483647, %v93_v42 }
  0x23   :  { %v66_v59 = vor.u32 1.1754944e-38, %v65_v50  ;;  %v43_v61 = vmul.f32 %v42_v48, %v223_v2  ;;  %vm64_vm5 = vcmp.eq.f32.partialorder %v63_v54, 8.507059e+37  ;;  %v83_v4 = vmul.f32 %v82_v51, %v226_v3 }
  0x24   :  { %v106_v63 = vor.u32 1.1754944e-38, %v105_v55  ;;  %vm104_vm7 = vcmp.eq.f32.partialorder %v103_v57, 8.507059e+37 }
  0x27   :  { %v143_v46 = vpop.eup %142 }
  0x28   :  { %v145_v47 = vpop.eup %144  ;;  %v55_v49 = vmul.f32 %v143_v46, %v53_v40  ;;  %vm60_vm1 = vweird.f32 %v143_v46 }
  0x29   :  { %v95_v52 = vmul.f32 %v145_v47, %v93_v42  ;;  %vm100_vm3 = vweird.f32 %v145_v47  ;;  %vm61_vm4 = vmor %vm59_vm0, %vm60_vm1 }
  0x2a   :  { %v56_v53 = vsub.f32 1.0, %v55_v49  ;;  %vm101_vm6 = vmor %vm99_vm2, %vm100_vm3 }
  0x2b   :  { %v96_v56 = vsub.f32 1.0, %v95_v52 }
  0x2c   :  { %v57_v58 = vmul.f32 %v143_v46, %v56_v53 }
  0x2d   :  { %v97_v60 = vmul.f32 %v145_v47, %v96_v56 }
  0x2e   :  { %v58_v62 = vadd.f32 %v143_v46, %v57_v58 }
  0x2f   :  { %v98_v5 = vadd.f32 %v145_v47, %v97_v60 }
  0x30   :  { %v62_v6 = vsel %vm61_vm4, %v143_v46, %v58_v62 }
  0x31   :  { %v67_v7 = vsel %vm64_vm5, %v66_v59, %v62_v6  ;;  %v102_v8 = vsel %vm101_vm6, %v145_v47, %v98_v5 }
  0x32   :  { %v68_v9 = vmul.f32 %v67_v7, %v43_v61  ;;  %v107_v10 = vsel %vm104_vm7, %v106_v63, %v102_v8 }
  0x33   :  { %v108_v11 = vmul.f32 %v107_v10, %v83_v4 }
  0x34   :  { %v136_v13 = vclamps-f32 %v68_v9, 1.0 }
  0x35   :  { %v137_v2 = vclamps-f32 %v108_v11, 1.0 }
  0x36   :  { %v111_v15 = vadd.f32 1.0, %v136_v13 }
  0x37   :  { %v112_v3 = vadd.f32 1.0, %v137_v2 }
  0x38   :  { %v113_v16 = vmul.f32 %v111_v15, %v27_v12 }
  0x39   :  { %v114_v17 = vmul.f32 %v112_v3, %v28_v14 }
  0x3a   :  { %115 = vst [vmem:[#allocation5] sm:$0xff] %v113_v16 }
  0x3b   :  { %116 = vst [vmem:[#allocation5 + $0x8] sm:$0xff] %v114_v17 }
  0x3c   :  { %129 = dma.vmem_to_hbm [thread:$0]  %s122_s13, 256, %s124_s16, [#allocation4], %s199_s11, %s199_s11, %s200_s12  }
  0x3d   :  { %196 = dma.done.wait [#allocation4], 256  }
  0x3e   :  { %197 = vsyncadd [#allocation4], 4294967040 }
  0x3f   :  { %134 = vsyncpa [#allocation3], 1 }
  0x40   :  { %135 = vsyncpa [#allocation4], 1 }

</bundles_post_ra>
